<compile_context>
chip_gen: v6e
topology: v6e:2x2x1
jax: 0.10.0
libtpu: 0.0.40
codegen_flags: <defaults>
</compile_context>

<pallas_src>
import functools
import math

import jax
import jax.numpy as jnp
from jax.experimental import pallas as pl
from jax.experimental.pallas import tpu as pltpu

LANE = 128
BF16_SUBLANE = 16   # bf16 packs (16, 128) per vreg -> align batch tiles to 16
HIDDEN = 256


def _round_up(n, m):
    return ((n + m - 1) // m) * m


def _act_dtype_for_backend():
    """bf16 tanh on v6e/v7x (bf16 VPU/EUP); f32 tanh on v5e and older."""
    try:
        kind = jax.devices()[0].device_kind.lower()
    except Exception:
        return jnp.bfloat16
    for old in ("v2", "v3", "v4", "v5"):
        if old in kind:
            return jnp.float32
    return jnp.bfloat16


def _policy_kernel(x_ref, w1_ref, b1_ref, w2_ref, b2_ref, w3_ref, b3_ref,
                   mean_ref, *, act_dtype):
    # fc1 + tanh : MXU matmul in bf16, f32 accumulation; tanh in act_dtype
    # (bf16 on v6e/v7x -> feeds next MXU with no extra cast; f32 on v5e).
    h1 = jnp.tanh(
        (jnp.dot(x_ref[...], w1_ref[...], preferred_element_type=jnp.float32)
         + b1_ref[...]).astype(act_dtype))
    # fc2 + tanh
    h2 = jnp.tanh(
        (jnp.dot(h1.astype(jnp.bfloat16), w2_ref[...],
                 preferred_element_type=jnp.float32)
         + b2_ref[...]).astype(act_dtype))
    # mean head (no activation); lane-dense block, stored as bf16 to halve the
    # dominant HBM writeback (only 8 of 128 lanes are real data anyway).
    mean_ref[...] = (
        jnp.dot(h2.astype(jnp.bfloat16), w3_ref[...],
                preferred_element_type=jnp.float32)
        + b3_ref[...]).astype(mean_ref.dtype)


def init_params(key, state_dim, action_dim, hidden=HIDDEN):
    """Deterministic init mimicking nn.Linear default (U(-1/sqrt(in), 1/sqrt(in))).

    Weights stored [in_features, out_features] (transposed vs PyTorch) so the
    kernel computes x @ W + b.  Raw (unpadded, f32) params — run
    prepare_params() before calling the kernel.
    """
    ks = jax.random.split(key, 6)

    def linear(kw, kb, fan_in, fan_out):
        bound = 1.0 / math.sqrt(fan_in)
        w = jax.random.uniform(kw, (fan_in, fan_out), jnp.float32, -bound, bound)
        b = jax.random.uniform(kb, (1, fan_out), jnp.float32, -bound, bound)
        return w, b

    w1, b1 = linear(ks[0], ks[1], state_dim, hidden)
    w2, b2 = linear(ks[2], ks[3], hidden, hidden)
    w3, b3 = linear(ks[4], ks[5], hidden, action_dim)
    log_std = jnp.zeros((action_dim,), jnp.float32)  # nn.Parameter(torch.zeros(action_dim))
    return (w1, b1, w2, b2, w3, b3, log_std)


def prepare_params(params):
    """One-time host-side prep: pad to lane multiples, cast matmul weights to bf16."""
    w1, b1, w2, b2, w3, b3, log_std = params
    state_dim, hidden = w1.shape
    action_dim = w3.shape[1]
    sd_pad = _round_up(state_dim, LANE)
    ad_pad = _round_up(action_dim, LANE)

    w1p = (jnp.zeros((sd_pad, hidden), jnp.float32)
           .at[:state_dim, :].set(w1).astype(jnp.bfloat16))
    w2p = w2.astype(jnp.bfloat16)
    w3p = (jnp.zeros((hidden, ad_pad), jnp.float32)
           .at[:, :action_dim].set(w3).astype(jnp.bfloat16))
    b3p = jnp.zeros((1, ad_pad), jnp.float32).at[:, :action_dim].set(b3)

    return dict(w1=w1p, b1=b1, w2=w2p, b2=b2, w3=w3p, b3=b3p,
                log_std=log_std, state_dim=state_dim, action_dim=action_dim,
                sd_pad=sd_pad, ad_pad=ad_pad, hidden=hidden)


def policy_forward(x, prepared, *, block_b=1024):
    """x: [B, state_dim] f32. Returns (mean [B, action_dim] f32, std [action_dim] f32)."""
    B = x.shape[0]
    sd = prepared["state_dim"]
    ad = prepared["action_dim"]
    sd_pad = prepared["sd_pad"]
    ad_pad = prepared["ad_pad"]
    hidden = prepared["hidden"]

    # Batch tile selection:
    #  * big batches: block_b rows per step (rounded to bf16 sublane packing),
    #  * small/medium batches: split into >=2 tiles so both v7x TensorCores work.
    if B > block_b:
        tb = _round_up(block_b, BF16_SUBLANE)
    else:
        half = -(-B // 2) if B > BF16_SUBLANE else B  # ceil(B/2) once worth splitting
        tb = _round_up(max(half, 1), BF16_SUBLANE)
    b_pad = _round_up(max(B, 1), tb)
    grid = (b_pad // tb,)

    # Fused host-side pad + bf16 cast (no padded f32 intermediate).
    xp = (jnp.zeros((b_pad, sd_pad), jnp.bfloat16)
          .at[:B, :sd].set(x.astype(jnp.bfloat16)))

    resident = lambda i: (0, 0)  # weights/biases: same block every step -> VMEM-resident

    weight_bytes = (sd_pad * hidden + hidden * hidden + hidden * ad_pad) * 2 \
                   + (2 * hidden) * 4 + ad_pad * 4
    cost = pl.CostEstimate(
        flops=2 * b_pad * (sd_pad * hidden + hidden * hidden + hidden * ad_pad),
        transcendentals=b_pad * 2 * hidden,
        bytes_accessed=b_pad * sd_pad * 2 + b_pad * ad_pad * 2 + weight_bytes,
    )

    kernel = functools.partial(_policy_kernel, act_dtype=_act_dtype_for_backend())

    mean_padded = pl.pallas_call(
        kernel,
        out_shape=jax.ShapeDtypeStruct((b_pad, ad_pad), jnp.bfloat16),
        grid=grid,
        in_specs=[
            pl.BlockSpec((tb, sd_pad), lambda i: (i, 0)),
            pl.BlockSpec((sd_pad, hidden), resident),
            pl.BlockSpec((1, hidden), resident),
            pl.BlockSpec((hidden, hidden), resident),
            pl.BlockSpec((1, hidden), resident),
            pl.BlockSpec((hidden, ad_pad), resident),
            pl.BlockSpec((1, ad_pad), resident),
        ],
        out_specs=pl.BlockSpec((tb, ad_pad), lambda i: (i, 0)),
        compiler_params=pltpu.CompilerParams(
            dimension_semantics=("parallel",),
            vmem_limit_bytes=32 * 1024 * 1024,  # safe on v5e/v6e (128 MiB) and v7x (64 MiB)
        ),
        cost_estimate=cost,
    )(xp, prepared["w1"], prepared["b1"], prepared["w2"], prepared["b2"],
      prepared["w3"], prepared["b3"])

    mean = mean_padded[:B, :ad].astype(jnp.float32)
    std = jnp.exp(prepared["log_std"])  # 8 scalars of EUP work: hoisted out of the kernel
    return mean, std


def reference_forward(x, params):
    """Pure-JAX f32 reference matching the PyTorch module."""
    w1, b1, w2, b2, w3, b3, log_std = params
    h1 = jnp.tanh(x @ w1 + b1)
    h2 = jnp.tanh(h1 @ w2 + b2)
    mean = h2 @ w3 + b3
    std = jnp.exp(log_std)
    return mean, std


if __name__ == "__main__":
    key = jax.random.PRNGKey(0)
    k_param, k_x = jax.random.split(key)

    batch = 50        # not a tile multiple -> exercises batch padding & the 2-tile split
    state_dim = 111   # Ant observation dim (sub-lane-width -> exercises K padding)
    action_dim = 8    # Ant action dim

    params = init_params(k_param, state_dim, action_dim)
    prepared = prepare_params(params)
    x = jax.random.normal(k_x, (batch, state_dim), jnp.float32)

    # B=50, block_b default -> tb=32, grid=(2,): gridded, weight-resident, >=2 steps.
    mean, std = policy_forward(x, prepared)
    jax.block_until_ready((mean, std))

    # Correctness check against pure-JAX f32 reference.
    mean_ref, std_ref = reference_forward(x, params)
    assert mean.shape == (batch, action_dim)
    assert std.shape == (action_dim,)
    # bf16 matmul operands, bf16 tanh (v6e/v7x) and bf16 output -> loose tolerance.
    assert jnp.allclose(mean, mean_ref, atol=5e-2, rtol=5e-2), \
        float(jnp.max(jnp.abs(mean - mean_ref)))
    assert jnp.allclose(std, std_ref, atol=1e-6, rtol=1e-6)

    print("KERNEL_OK")
</pallas_src>

<mosaic_0001>
module attributes {stable_mosaic.version = 11 : i64} {
  func.func @_policy_kernel(%arg0: i32, %arg1: memref<32x128xbf16, #tpu.memory_space<vmem>>, %arg2: memref<128x256xbf16, #tpu.memory_space<vmem>>, %arg3: memref<1x256xf32, #tpu.memory_space<vmem>>, %arg4: memref<256x256xbf16, #tpu.memory_space<vmem>>, %arg5: memref<1x256xf32, #tpu.memory_space<vmem>>, %arg6: memref<256x128xbf16, #tpu.memory_space<vmem>>, %arg7: memref<1x128xf32, #tpu.memory_space<vmem>>, %arg8: memref<32x128xbf16, #tpu.memory_space<vmem>>) attributes {dimension_semantics = [#tpu.dimension_semantics<parallel>], iteration_bounds = array<i64: 2>, scalar_prefetch = 0 : i64, scratch_operands = 0 : i64, tpu.core_type = #tpu.core_type<tc>, window_params = [{transform_indices = @transform_0, window_bounds = array<i64: 32, 128>}, {pipeline_mode = #tpu.pipeline_mode<synchronous>, transform_indices = @transform_1, window_bounds = array<i64: 128, 256>}, {pipeline_mode = #tpu.pipeline_mode<synchronous>, transform_indices = @transform_2, window_bounds = array<i64: 1, 256>}, {pipeline_mode = #tpu.pipeline_mode<synchronous>, transform_indices = @transform_3, window_bounds = array<i64: 256, 256>}, {pipeline_mode = #tpu.pipeline_mode<synchronous>, transform_indices = @transform_4, window_bounds = array<i64: 1, 256>}, {pipeline_mode = #tpu.pipeline_mode<synchronous>, transform_indices = @transform_5, window_bounds = array<i64: 256, 128>}, {pipeline_mode = #tpu.pipeline_mode<synchronous>, transform_indices = @transform_6, window_bounds = array<i64: 1, 128>}, {transform_indices = @transform_7, window_bounds = array<i64: 32, 128>}]} {
    %c0 = arith.constant 0 : index
    %c0_0 = arith.constant 0 : index
    %0 = vector.load %arg1[%c0, %c0_0] : memref<32x128xbf16, #tpu.memory_space<vmem>>, vector<32x128xbf16>
    %c0_1 = arith.constant 0 : index
    %c0_2 = arith.constant 0 : index
    %1 = vector.load %arg2[%c0_1, %c0_2] : memref<128x256xbf16, #tpu.memory_space<vmem>>, vector<128x256xbf16>
    %cst = arith.constant dense<0.000000e+00> : vector<32x256xf32>
    %2 = tpu.matmul %0, %1, %cst {dimension_numbers = #tpu.dot_dimension_numbers<[1], [0], [0], [1], [0, 0, 1, 1], [], []>} : vector<32x128xbf16>, vector<128x256xbf16>, vector<32x256xf32> -> vector<32x256xf32>
    %c0_3 = arith.constant 0 : index
    %c0_4 = arith.constant 0 : index
    %3 = vector.load %arg3[%c0_3, %c0_4] : memref<1x256xf32, #tpu.memory_space<vmem>>, vector<1x256xf32>
    %4 = vector.broadcast %3 : vector<1x256xf32> to vector<32x256xf32>
    %5 = arith.addf %2, %4 : vector<32x256xf32>
    %6 = arith.truncf %5 : vector<32x256xf32> to vector<32x256xbf16>
    %7 = math.tanh %6 : vector<32x256xbf16>
    %c0_5 = arith.constant 0 : index
    %c0_6 = arith.constant 0 : index
    %8 = vector.load %arg4[%c0_5, %c0_6] : memref<256x256xbf16, #tpu.memory_space<vmem>>, vector<256x256xbf16>
    %cst_7 = arith.constant dense<0.000000e+00> : vector<32x256xf32>
    %9 = tpu.matmul %7, %8, %cst_7 {dimension_numbers = #tpu.dot_dimension_numbers<[1], [0], [0], [1], [0, 0, 1, 1], [], []>} : vector<32x256xbf16>, vector<256x256xbf16>, vector<32x256xf32> -> vector<32x256xf32>
    %c0_8 = arith.constant 0 : index
    %c0_9 = arith.constant 0 : index
    %10 = vector.load %arg5[%c0_8, %c0_9] : memref<1x256xf32, #tpu.memory_space<vmem>>, vector<1x256xf32>
    %11 = vector.broadcast %10 : vector<1x256xf32> to vector<32x256xf32>
    %12 = arith.addf %9, %11 : vector<32x256xf32>
    %13 = arith.truncf %12 : vector<32x256xf32> to vector<32x256xbf16>
    %14 = math.tanh %13 : vector<32x256xbf16>
    %c0_10 = arith.constant 0 : index
    %c0_11 = arith.constant 0 : index
    %15 = vector.load %arg6[%c0_10, %c0_11] : memref<256x128xbf16, #tpu.memory_space<vmem>>, vector<256x128xbf16>
    %cst_12 = arith.constant dense<0.000000e+00> : vector<32x128xf32>
    %16 = tpu.matmul %14, %15, %cst_12 {dimension_numbers = #tpu.dot_dimension_numbers<[1], [0], [0], [1], [0, 0, 1, 1], [], []>} : vector<32x256xbf16>, vector<256x128xbf16>, vector<32x128xf32> -> vector<32x128xf32>
    %c0_13 = arith.constant 0 : index
    %c0_14 = arith.constant 0 : index
    %17 = vector.load %arg7[%c0_13, %c0_14] : memref<1x128xf32, #tpu.memory_space<vmem>>, vector<1x128xf32>
    %18 = vector.broadcast %17 : vector<1x128xf32> to vector<32x128xf32>
    %19 = arith.addf %16, %18 : vector<32x128xf32>
    %20 = arith.truncf %19 : vector<32x128xf32> to vector<32x128xbf16>
    %c0_15 = arith.constant 0 : index
    %c0_16 = arith.constant 0 : index
    %21 = vector.load %arg8[%c0_15, %c0_16] : memref<32x128xbf16, #tpu.memory_space<vmem>>, vector<32x128xbf16>
    tpu.vector_store %arg8[%c0_15, %c0_16], %20 {strides = array<i32>} : memref<32x128xbf16, #tpu.memory_space<vmem>>, vector<32x128xbf16>,
    return
  }
  func.func @transform_0(%arg0: i32) -> (i32, i32) {
    %c0_i32 = arith.constant 0 : i32
    %c0_i32_0 = arith.constant 0 : i32
    return %arg0, %c0_i32 : i32, i32
  }
  func.func @transform_1(%arg0: i32) -> (i32, i32) {
    %c0_i32 = arith.constant 0 : i32
    %c0_i32_0 = arith.constant 0 : i32
    %c0_i32_1 = arith.constant 0 : i32
    return %c0_i32, %c0_i32_0 : i32, i32
  }
  func.func @transform_2(%arg0: i32) -> (i32, i32) {
    %c0_i32 = arith.constant 0 : i32
    %c0_i32_0 = arith.constant 0 : i32
    %c0_i32_1 = arith.constant 0 : i32
    return %c0_i32, %c0_i32_0 : i32, i32
  }
  func.func @transform_3(%arg0: i32) -> (i32, i32) {
    %c0_i32 = arith.constant 0 : i32
    %c0_i32_0 = arith.constant 0 : i32
    %c0_i32_1 = arith.constant 0 : i32
    return %c0_i32, %c0_i32_0 : i32, i32
  }
  func.func @transform_4(%arg0: i32) -> (i32, i32) {
    %c0_i32 = arith.constant 0 : i32
    %c0_i32_0 = arith.constant 0 : i32
    %c0_i32_1 = arith.constant 0 : i32
    return %c0_i32, %c0_i32_0 : i32, i32
  }
  func.func @transform_5(%arg0: i32) -> (i32, i32) {
    %c0_i32 = arith.constant 0 : i32
    %c0_i32_0 = arith.constant 0 : i32
    %c0_i32_1 = arith.constant 0 : i32
    return %c0_i32, %c0_i32_0 : i32, i32
  }
  func.func @transform_6(%arg0: i32) -> (i32, i32) {
    %c0_i32 = arith.constant 0 : i32
    %c0_i32_0 = arith.constant 0 : i32
    %c0_i32_1 = arith.constant 0 : i32
    return %c0_i32, %c0_i32_0 : i32, i32
  }
  func.func @transform_7(%arg0: i32) -> (i32, i32) {
    %c0_i32 = arith.constant 0 : i32
    %c0_i32_0 = arith.constant 0 : i32
    return %arg0, %c0_i32 : i32, i32
  }
}

</mosaic_0001>

<bundles_post_ra>
// kernel: tpu_custom_call.1
= control target key start
LH: loop header
LB: loop body
LE: loop exit
PB: predicated region body
PF: predicated region fallthrough
CT: control target
= control target key end

     0   :  { %s1907_s0 = inlined_call_operand.hbm [shape: bf16[64,128], index: 0, kind: input, shape index: {}]   ;;  %s1908_s1 = inlined_call_operand.hbm [shape: bf16[128,256], index: 1, kind: input, shape index: {}]   ;;  %s1909_s2 = inlined_call_operand.vmem [shape: f32[1,256], index: 2, kind: input, shape index: {}]   ;;  %s1910_s3 = inlined_call_operand.hbm [shape: bf16[256,256], index: 3, kind: input, shape index: {}]   ;;  %s1911_s4 = inlined_call_operand.vmem [shape: f32[1,256], index: 4, kind: input, shape index: {}]   ;;  %s1912_s5 = inlined_call_operand.hbm [shape: bf16[256,128], index: 5, kind: input, shape index: {}]   ;;  %s1913_s6 = inlined_call_operand.vmem [shape: f32[1,128], index: 6, kind: input, shape index: {}]   ;;  %s1914_s7 = inlined_call_operand.hbm [shape: bf16[64,128], index: 7, kind: output, shape index: {}]  }
   0x1   :  { %1921 = sst [smem:[#allocation15_spill]] %s1908_s1 }
   0x2   :  { %12 = vsyncpa [#allocation3], 0 }
   0x3   :  { %14 = vsyncpa [#allocation3 + $0x1], 0 }
   0x4   :  { %15 = vsyncpa [#allocation6], 0 }
   0x5   :  { %16 = vsyncpa [#allocation9], 0 }
   0x6   :  { %17 = vsyncpa [#allocation4], 0 }
   0x7   :  { %19 = vsyncpa [#allocation4 + $0x1], 0  ;;  %s1672_s24 = smov 0   ;;  %s1674_s25 = smov 0  }
   0x8   :  { %s1676_s26 = smov 0   ;;  %s1678_s27 = smov 0  }
   0x9 LB: > { %s1693_s28 = sadd.s32 4294967295, %s1618_s27   ;;  %s1114_s29 = sadd.s32 4294967294, %s1618_s27   ;;  %s1618_s27 = sphi %s1678_s27, %s1944_s27   ;;  %s1614_s26 = sphi %s1676_s26, %s1943_s26   ;;  %s1610_s25 = sphi %s1674_s25, %s1942_s25   ;;  %s1606_s24 = sphi %s1672_s24, %s1941_s24  }
   0xa   : > { %p45_p0 = scmp.ne.s32.totalorder %s1610_s25, %s1606_s24  ;;  %p1915_p1 = scmp.eq.s32.totalorder %s1693_s28, 0 }
   0xb   : > { %p201_p3 = scmp.eq.s32.totalorder %s1114_s29, 1  ;;  %p1115_p5 = scmp.ge.s32.totalorder %s1618_s27, 1 }
   0xc   : > { %p1702_p4 = por %p1915_p1, %p45_p0  ;;  %p208_p7 = scmp.lt.s32.totalorder %s1618_s27, 3 }
   0xd   : > { %p1707_p6 = por %p201_p3, %p45_p0  ;;  %s1620_s10 = smov [#allocation5]  }
   0xe   : > { %s1922_s30 = scalar_select %p1702_p4, 1, 0 }
   0xf   : > { %s1923_s8 = scalar_select %p1707_p6, 1, 0 }
  0x10   : > { %p1712_p8 = pnand %p1115_p5, %p208_p7  ;;  %s220_s11 = sshll.u32 %s1620_s10, 4  ;;  %s221_s11 = int_to_ptr.vmem [resolvable:$true] %s220_s11 }
  0x11   : > { %s1621_s13 = smov [#allocation7]   ;;  %s1622_s15 = smov [#allocation8]  }
  0x12   : > { %s1924_s9 = scalar_select %p1712_p8, 1, 0 }
  0x13   : > { %p1266_p9 = pneg %p1712_p8  ;;  %s236_s14 = sshll.u32 %s1621_s13, 4  ;;  %s237_s14 = int_to_ptr.vmem [resolvable:$true] %s236_s14 }
  0x14   : > { %s252_s16 = sshll.u32 %s1622_s15, 4  ;;  %s1451_s17 = scalar_lea.vmem %s221_s11, 2048  ;;  %s253_s16 = int_to_ptr.vmem [resolvable:$true] %s252_s16 }
  0x15   : > { %p1721_p11 = pnand %p1266_p9, %p1915_p1  ;;  %p1452_p13 = scmp.ne.s32.totalorder %s221_s11, %s1451_s17 }
  0x16   : > { %p1459_p5 = scmp.lt.s32.totalorder %s221_s11, %s221_s11  ;;  %p1460_p7 = scmp.lt.s32.totalorder %s1451_s17, %s1451_s17 }
  0x17   : > { %p1442_p12 = pneg %p1721_p11 }
  0x18   : > { %p1461_p9 = por %p1460_p7, %p1459_p5 }
  0x19   : > { %p1454_p0 = pnand %p1452_p13, %p1442_p12 }
  0x1b   : > { %p1455_p3 = pneg %p1454_p0 }
  0x1d   : > { %p1462_p10 = pnand %p1461_p9, %p1455_p3 }
  0x1f   : > { %1465 = shalt.err (!%p1462_p10)
}
  0x20   : > { %s1623_s18 = smov 128   ;;  %s1624_s19 = smov 8  }
  0x21   : > { %s1926_s1 = sld [smem:[#allocation15_spill]]  ;;  %s1477_s22 = scalar_lea.vmem %s237_s14, 4096 }
  0x22   : > { %p1478_p1 = scmp.ne.s32.totalorder %s237_s14, %s1477_s22  ;;  %p1485_p2 = scmp.lt.s32.totalorder %s237_s14, %s237_s14 }
  0x23   : > { %p1486_p6 = scmp.lt.s32.totalorder %s1477_s22, %s1477_s22 }
  0x24   : > { %p1480_p13 = pnand %p1478_p1, %p1442_p12 }
  0x25   : > { %p1487_p5 = por %p1486_p6, %p1485_p2 }
  0x26   : > { %p1481_p0 = pneg %p1480_p13 }
  0x27   : > { %1269 = dma.hbm_to_vmem [thread:$0]  (!%p1721_p11), %s1926_s1, 2048, %s221_s11, [#allocation6], %s1623_s18, %s1623_s18, %s1624_s19  }
  0x28   : > { %p1488_p3 = pnand %p1487_p5, %p1481_p0 }
  0x2a   : > { %1491 = shalt.err (!%p1488_p3)
}
  0x2b   : > { %1272 = dma.hbm_to_vmem [thread:$0]  (!%p1721_p11), %s1910_s3, 4096, %s237_s14, [#allocation6], %s1623_s18, %s1623_s18, %s1624_s19  }
  0x2c   : > { %s1503_s10 = scalar_lea.vmem %s253_s16, 2048  ;;  %p1511_p9 = scmp.lt.s32.totalorder %s253_s16, %s253_s16 }
  0x2d   : > { %p1504_p10 = scmp.ne.s32.totalorder %s253_s16, %s1503_s10  ;;  %p1512_p13 = scmp.lt.s32.totalorder %s1503_s10, %s1503_s10 }
  0x2f   : > { %p1506_p7 = pnand %p1504_p10, %p1442_p12  ;;  %p1513_p4 = por %p1512_p13, %p1511_p9 }
  0x31   : > { %p1507_p1 = pneg %p1506_p7 }
  0x33   : > { %p1514_p2 = pnand %p1513_p4, %p1507_p1 }
  0x35   : > { %1517 = shalt.err (!%p1514_p2)
}
  0x36   : > { %s1917_s11 = smov 64   ;;  %s1918_s13 = smov 4  }
  0x37   : > { %1275 = dma.hbm_to_vmem [thread:$0]  (!%p1721_p11), %s1912_s5, 2048, %s253_s16, [#allocation9], %s1917_s11, %s1917_s11, %s1918_s13  }
  0x38   : > { %s1755_s17 = sadd.s32 1, %s1618_s27   ;;  %s32_s19 = sadd.s32 1, %s1614_s26 }
  0x39   : > { %s29_s18 = ssub.s32 %s1618_s27, %s1755_s17  ;;  %p39_p6 = scmp.ne.s32.totalorder %s1614_s26, %s1610_s25 }
  0x3a   : > { %p30_p4 = scmp.eq.s32.totalorder %s29_s18, 0  ;;  %p40_p12 = scmp.eq.s32.totalorder %s1618_s27, 0 }
  0x3b   : > { %p1287_p0 = scmp.lt.s32.totalorder %s1618_s27, 2  ;;  %p1927_p3 = scmp.eq.s32.totalorder %s1693_s28, 1 }
  0x3c   : > { %s1765_s20 = scalar_select %p30_p4, %s1614_s26, %s32_s19  }
  0x3d   : > { %p41_p5 = por %p40_p12, %p39_p6  ;;  %p1769_p10 = por %p1927_p3, %p39_p6 }
  0x3e   : > { %s269_s21 = sand.u32 1, %s1614_s26   ;;  %s1205_s22 = sshll.u32 %s1618_s27, 8 }
  0x3f   : > { %s1928_s12 = scalar_select %p1769_p10, 1, 0 }
  0x40   : > { %s1120_s16 = sshll.u32 %s269_s21, 4  ;;  %s1778_s10 = scalar_lea.hbm %s1907_s0, %s1205_s22 }
  0x41   : > { %s273_s14 = scalar_lea.vmem [#allocation2], %s1120_s16  ;;  %p1780_p11 = pnand %p1287_p0, %p41_p5 }
  0x42   : > { %s280_s15 = sshll.u32 %s273_s14, 4  ;;  %s1786_s19 = scalar_lea.sflag [#allocation3], %s269_s21  ;;  %s1784_s15 = int_to_ptr.vmem [resolvable:$true] %s280_s15 }
  0x43   : > { %s1518_s11 = scalar_lea.hbm %s1778_s10, 256  ;;  %p1520_p1 = pneg %p1780_p11 }
  0x44   : > { %p1519_p7 = scmp.ne.s32.totalorder %s1778_s10, %s1518_s11  ;;  %s1523_s16 = scalar_lea.hbm %s1907_s0, 512 }
  0x45   : > { %p1524_p2 = scmp.lt.s32.totalorder %s1778_s10, %s1907_s0  ;;  %p1525_p4 = scmp.lt.s32.totalorder %s1523_s16, %s1518_s11 }
  0x46   : > { %p1521_p9 = pnand %p1520_p1, %p1519_p7 }
  0x47   : > { %p1526_p6 = por %p1525_p4, %p1524_p2 }
  0x48   : > { %p1522_p13 = pneg %p1521_p9 }
  0x4a   : > { %p1527_p12 = pnand %p1526_p6, %p1522_p13 }
  0x4c   : > { %1530 = shalt.err (!%p1527_p12)
}
  0x4d   : > { %s1531_s21 = scalar_lea.vmem %s1784_s15, 256  ;;  %s1627_s13 = smov [#allocation2]  }
  0x4e   : > { %p1532_p0 = scmp.ne.s32.totalorder %s1784_s15, %s1531_s21  ;;  %s1536_s1 = sshll.u32 %s1627_s13, 4  ;;  %s1537_s1 = int_to_ptr.vmem [resolvable:$false] %s1536_s1 }
  0x4f   : > { %s1538_s22 = scalar_lea.vmem %s1537_s1, 512  ;;  %p1539_p7 = scmp.lt.s32.totalorder %s1784_s15, %s1537_s1 }
  0x50   : > { %p1534_p5 = pnand %p1532_p0, %p1520_p1  ;;  %p1540_p9 = scmp.lt.s32.totalorder %s1538_s22, %s1531_s21 }
  0x52   : > { %p1535_p3 = pneg %p1534_p5  ;;  %p1541_p10 = por %p1540_p9, %p1539_p7 }
  0x54   : > { %p1542_p8 = pnand %p1541_p10, %p1535_p3 }
  0x56   : > { %1545 = shalt.err (!%p1542_p8)
}
  0x57   : > { %s1930_s11 = smov 4   ;;  %s1931_s23 = smov 64  }
  0x58   : > { %1279 = dma.hbm_to_vmem [thread:$0]  (!%p1780_p11), %s1778_s10, 256, %s1784_s15, %s1786_s19, %s1931_s23, %s1931_s23, %s1930_s11  }
  0x59   : > { %p1932_p1 = scmp.ne.s32.totalorder %s1924_s9, 0 }
  0x5a   : > { %s1813_s13 = sand.u32 (!%p1932_p1), 1, %s1610_s25   ;;  %p1933_p8 = scmp.ne.s32.totalorder (!%p1932_p1), %s1922_s30, 0 }
  0x5b   : > { %292 = sbr.rel (%p1932_p1) target bundleno = 801 (0x321), region = 48  ;;  %s1124_s1 = sshll.u32 (!%p1932_p1), %s1813_s13, 4 }
  0x5c   : > { %s295_s16 = scalar_lea.sflag (!%p1932_p1), [#allocation3], %s1813_s13  ;;  %s1819_s18 = scalar_lea.vmem (!%p1932_p1), [#allocation2], %s1124_s1 }
  0x60   : > { %1589 = dma.done.wait (%p1933_p8), %s295_s16, 256  }
  0x61   : > { %1591 = vsyncadd (%p1933_p8), %s295_s16, 4294967040  ;;  %p1934_p10 = scmp.eq.s32.totalorder %s1693_s28, 0 }
  0x63   : > { %1593 = dma.done.wait (%p1934_p10), [#allocation6], 6144   ;;  %p1935_p11 = pmov %p1934_p10 }
  0x64   : > { %p1936_p13 = pmov %p1934_p10 }
  0x65   : > { %1595 = vsyncadd (%p1935_p11), [#allocation6], 4294961152 }
  0x66   : > { %1597 = dma.done.wait (%p1936_p13), [#allocation9], 2048   ;;  %p1937_p2 = pmov %p1934_p10 }
  0x67   : > { %v1628_v0 = vmov 0   ;;  %v1334_v1 = vld [vmem:[#allocation5 + $0x74] ss:$8 sps:$4 sm:$0xff]   ;;  %v1336_v2 = vld [vmem:[#allocation5 + $0x70] ss:$8 sps:$4 sm:$0xff]   ;;  %v366_v54 = vlaneseq  ;;  %s340_s14 = scalar_lea.vmem [#allocation10], %s1124_s1 }
  0x68   : > { %1599 = vsyncadd (%p1937_p2), [#allocation9], 4294965248  ;;  %500 = vmatprep.mubr.bf16.mxu0 %v1628_v0  ;;  %468 = vmatprep.subr.bf16.mxu0 %v1334_v1  ;;  %v1337_v3 = vld [vmem:[#allocation5 + $0x64] ss:$8 sps:$4 sm:$0xff]   ;;  %v1339_v4 = vld [vmem:[#allocation5 + $0x60] ss:$8 sps:$4 sm:$0xff]  }
  0x69   : > { %469 = vmatpush1.bf16.msra.mxu0 %v1336_v2  ;;  %v1340_v5 = vld [vmem:[#allocation5 + $0x54] ss:$8 sps:$4 sm:$0xff]   ;;  %v1342_v6 = vld [vmem:[#allocation5 + $0x50] ss:$8 sps:$4 sm:$0xff]   ;;  %v1343_v7 = vld [vmem:[#allocation5 + $0x44] ss:$8 sps:$4 sm:$0xff]  }
  0x6a   : > { %470 = vmatprep.subr.bf16.mxu0 %v1337_v3  ;;  %v1345_v8 = vld [vmem:[#allocation5 + $0x40] ss:$8 sps:$4 sm:$0xff]   ;;  %v1346_v9 = vld [vmem:[#allocation5 + $0x34] ss:$8 sps:$4 sm:$0xff]   ;;  %v1362_v11 = vld [vmem:[#allocation7 + $0x70] ss:$8 sps:$4 sm:$0xff]  }
  0x6b   : > { %v1360_v10 = vld [vmem:[#allocation7 + $0x74] ss:$8 sps:$4 sm:$0xff]   ;;  %v1363_v12 = vld [vmem:[#allocation7 + $0x64] ss:$8 sps:$4 sm:$0xff]   ;;  %v1348_v13 = vld [vmem:[#allocation5 + $0x30] ss:$8 sps:$4 sm:$0xff]  }
  0x6c   : > { %733 = vmatprep.subr.bf16.mxu1 %v1360_v10  ;;  %v1349_v14 = vld [vmem:[#allocation5 + $0x24] ss:$8 sps:$4 sm:$0xff]   ;;  %v1365_v15 = vld [vmem:[#allocation7 + $0x60] ss:$8 sps:$4 sm:$0xff]   ;;  %v1366_v16 = vld [vmem:[#allocation7 + $0x54] ss:$8 sps:$4 sm:$0xff]  }
  0x6d   : > { %471 = vmatpush1.bf16.msra.mxu0 %v1339_v4  ;;  %734 = vmatpush1.bf16.msra.mxu1 %v1362_v11  ;;  %v1351_v17 = vld [vmem:[#allocation5 + $0x20] ss:$8 sps:$4 sm:$0xff]   ;;  %v1352_v18 = vld [vmem:[#allocation5 + $0x14] ss:$8 sps:$4 sm:$0xff]   ;;  %v1368_v19 = vld [vmem:[#allocation7 + $0x50] ss:$8 sps:$4 sm:$0xff]  }
  0x6e   : > { %472 = vmatprep.subr.bf16.mxu0 %v1340_v5  ;;  %735 = vmatprep.subr.bf16.mxu1 %v1363_v12  ;;  %v1369_v20 = vld [vmem:[#allocation7 + $0x44] ss:$8 sps:$4 sm:$0xff]   ;;  %v1354_v21 = vld [vmem:[#allocation5 + $0x10] ss:$8 sps:$4 sm:$0xff]   ;;  %v1371_v23 = vld [vmem:[#allocation7 + $0x40] ss:$8 sps:$4 sm:$0xff]  }
  0x6f   : > { %v1355_v22 = vld [vmem:[#allocation5 + $0x4] ss:$8 sps:$4 sm:$0xff]   ;;  %v1357_v24 = vld [vmem:[#allocation5] ss:$8 sps:$4 sm:$0xff]   ;;  %v1372_v25 = vld [vmem:[#allocation7 + $0x34] ss:$8 sps:$4 sm:$0xff]  }
  0x70   : > { %v1374_v26 = vld [vmem:[#allocation7 + $0x30] ss:$8 sps:$4 sm:$0xff]   ;;  %v1375_v27 = vld [vmem:[#allocation7 + $0x24] ss:$8 sps:$4 sm:$0xff]   ;;  %v1377_v29 = vld [vmem:[#allocation7 + $0x20] ss:$8 sps:$4 sm:$0xff]  }
  0x71   : > { %473 = vmatpush1.bf16.msra.mxu0 %v1342_v6  ;;  %736 = vmatpush1.bf16.msra.mxu1 %v1365_v15  ;;  %v1358_v28 = vld [vmem:[%s1819_s18] sm:$0xff]   ;;  %v1359_v33 = vld [vmem:[%s1819_s18 + $0x8] sm:$0xff]   ;;  %v1835_v55 = vshrl.u32 %v366_v54, 7  ;;  %s1012_s21 = sshll.u32 %s340_s14, 4  ;;  %s1210_s22 = sshll.u32 %s1693_s28, 8  ;;  %s1859_s21 = int_to_ptr.vmem [resolvable:$true] %s1012_s21 }
  0x72   : > { %474 = vmatprep.subr.bf16.mxu0 %v1343_v7  ;;  %737 = vmatprep.subr.bf16.mxu1 %v1366_v16  ;;  %v1378_v30 = vld [vmem:[#allocation7 + $0x14] ss:$8 sps:$4 sm:$0xff]   ;;  %v1380_v31 = vld [vmem:[#allocation7 + $0x10] ss:$8 sps:$4 sm:$0xff]   ;;  %v1381_v32 = vld [vmem:[#allocation7 + $0x4] ss:$8 sps:$4 sm:$0xff]   ;;  %s1864_s16 = scalar_lea.hbm %s1914_s7, %s1210_s22 }
  0x73   : > { %v1383_v34 = vld [vmem:[#allocation7] ss:$8 sps:$4 sm:$0xff]   ;;  %v1384_v35 = vld [vmem:[#allocation7 + $0xf4] ss:$8 sps:$4 sm:$0xff]   ;;  %v1386_v36 = vld [vmem:[#allocation7 + $0xf0] ss:$8 sps:$4 sm:$0xff]  }
  0x74   : > { %v1387_v37 = vld [vmem:[#allocation7 + $0xe4] ss:$8 sps:$4 sm:$0xff]   ;;  %v1389_v38 = vld [vmem:[#allocation7 + $0xe0] ss:$8 sps:$4 sm:$0xff]   ;;  %v1390_v39 = vld [vmem:[#allocation7 + $0xd4] ss:$8 sps:$4 sm:$0xff]  }
  0x75   : > { %475 = vmatpush1.bf16.msra.mxu0 %v1345_v8  ;;  %738 = vmatpush1.bf16.msra.mxu1 %v1368_v19  ;;  %v1392_v40 = vld [vmem:[#allocation7 + $0xd0] ss:$8 sps:$4 sm:$0xff]   ;;  %v1393_v41 = vld [vmem:[#allocation7 + $0xc4] ss:$8 sps:$4 sm:$0xff]   ;;  %v1395_v42 = vld [vmem:[#allocation7 + $0xc0] ss:$8 sps:$4 sm:$0xff]  }
  0x76   : > { %476 = vmatprep.subr.bf16.mxu0 %v1346_v9  ;;  %739 = vmatprep.subr.bf16.mxu1 %v1369_v20  ;;  %v1396_v43 = vld [vmem:[#allocation7 + $0xb4] ss:$8 sps:$4 sm:$0xff]   ;;  %v1398_v44 = vld [vmem:[#allocation7 + $0xb0] ss:$8 sps:$4 sm:$0xff]   ;;  %v1399_v45 = vld [vmem:[#allocation7 + $0xa4] ss:$8 sps:$4 sm:$0xff]  }
  0x77   : > { %v1401_v46 = vld [vmem:[#allocation7 + $0xa0] ss:$8 sps:$4 sm:$0xff]   ;;  %v1402_v47 = vld [vmem:[#allocation7 + $0x94] ss:$8 sps:$4 sm:$0xff]   ;;  %v1404_v48 = vld [vmem:[#allocation7 + $0x90] ss:$8 sps:$4 sm:$0xff]  }
  0x78   : > { %v1405_v49 = vld [vmem:[#allocation7 + $0x84] ss:$8 sps:$4 sm:$0xff]   ;;  %v1407_v50 = vld [vmem:[#allocation7 + $0x80] ss:$8 sps:$4 sm:$0xff]   ;;  %v1408_v51 = vld [vmem:[#allocation8 + $0x78] sm:$0xff]   ;;  %v368_v56 = vsub.s32 0, %v1835_v55 }
  0x79   : > { %477 = vmatpush1.bf16.msra.mxu0 %v1348_v13  ;;  %740 = vmatpush1.bf16.msra.mxu1 %v1371_v23  ;;  %v1409_v52 = vld [vmem:[#allocation8 + $0x38] sm:$0xff]   ;;  %v1410_v53 = vld [vmem:[#allocation8 + $0x70] sm:$0xff]   ;;  %v364_v57 = vld [vmem:[%s1909_s2] sm:$0x3]  ;;  %v372_v58 = vsub.s32 1, %v1835_v55  ;;  %s999_s1 = scalar_lea.sflag [#allocation4], %s1813_s13 }
  0x7a   : > { %478 = vmatprep.subr.bf16.mxu0 %v1349_v14  ;;  %741 = vmatprep.subr.bf16.mxu1 %v1372_v25  ;;  %v369_v60 = vrot.slane %v364_v57, %v368_v56  ;;  %v1413_v23 = vld [vmem:[#allocation8 + $0x28] sm:$0xff]   ;;  %v1415_v25 = vld [vmem:[#allocation8 + $0x20] sm:$0xff]   ;;  %s1546_s18 = scalar_lea.vmem %s1859_s21, 256  ;;  %p1938_p6 = scmp.ne.s32.totalorder %s1928_s12, 0 }
  0x7b   : > { %v373_v62 = vrot.slane %v364_v57, %v372_v58  ;;  %p1547_p4 = scmp.ne.s32.totalorder %s1859_s21, %s1546_s18  ;;  %s1629_s28 = smov [#allocation10]  }
  0x7c   : > { %s1550_s30 = sshll.u32 %s1629_s28, 4  ;;  %s1551_s30 = int_to_ptr.vmem [resolvable:$false] %s1550_s30 }
  0x7d   : > { %479 = vmatpush1.bf16.msra.mxu0 %v1351_v17  ;;  %742 = vmatpush1.bf16.msra.mxu1 %v1374_v26  ;;  %v1416_v26 = vld [vmem:[#allocation8 + $0x58] sm:$0xff]   ;;  %p1548_p12 = pnand %p1547_p4, %p1938_p6  ;;  %s1552_s9 = scalar_lea.vmem %s1551_s30, 512 }
  0x7e   : > { %480 = vmatprep.subr.bf16.mxu0 %v1352_v18  ;;  %743 = vmatprep.subr.bf16.mxu1 %v1375_v27  ;;  %v1417_v27 = vld [vmem:[#allocation8 + $0x18] sm:$0xff]   ;;  %p1553_p5 = scmp.lt.s32.totalorder %s1859_s21, %s1551_s30  ;;  %p1554_p3 = scmp.lt.s32.totalorder %s1552_s9, %s1546_s18 }
  0x7f   : > { %p1549_p0 = pneg %p1548_p12 }
  0x80   : > { %p1555_p7 = por %p1554_p3, %p1553_p5 }
  0x81   : > { %481 = vmatpush1.bf16.msra.mxu0 %v1354_v21  ;;  %744 = vmatpush1.bf16.msra.mxu1 %v1377_v29  ;;  %v1411_v21 = vld [vmem:[#allocation8 + $0x30] sm:$0xff]  }
  0x82   : > { %482 = vmatprep.subr.bf16.mxu0 %v1355_v22  ;;  %745 = vmatprep.subr.bf16.mxu1 %v1378_v30  ;;  %v1412_v22 = vld [vmem:[#allocation8 + $0x68] sm:$0xff]   ;;  %v1419_v29 = vld [vmem:[#allocation8 + $0x10] sm:$0xff]   ;;  %p1556_p9 = pnand %p1555_p7, %p1549_p0 }
  0x83   : > { %v1420_v30 = vld [vmem:[#allocation8 + $0x48] sm:$0xff]  }
  0x85   : > { %483 = vmatpush1.bf16.msra.mxu0 %v1357_v24  ;;  %746 = vmatpush1.bf16.msra.mxu1 %v1380_v31  ;;  %v1414_v24 = vld [vmem:[#allocation8 + $0x60] sm:$0xff]   ;;  %v1421_v31 = vld [vmem:[#allocation8 + $0x8] sm:$0xff]  }
  0x86   : > { %747 = vmatprep.subr.bf16.mxu1 %v1381_v32  ;;  %1222 = vmatprep.subr.bf16.mxu0 %v1408_v51  ;;  %v1422_v32 = vld [vmem:[#allocation8 + $0x40] sm:$0xff]  }
  0x88   : > { %501 = vmatmul.mubr.bf16.vlgmr.msra.gmra.mxu0 %v1358_v28  ;;  %v1418_v28 = vld [vmem:[#allocation8 + $0x50] sm:$0xff]  }
  0x89   : > { %510 = vmatprep.mubr.bf16.mxu0 %v1628_v0  ;;  %748 = vmatpush1.bf16.msra.mxu1 %v1383_v34  ;;  %v561_v34 = vld [vmem:[%s1911_s4] sm:$0x3] }
  0x8a   : > { %749 = vmatprep.subr.bf16.mxu1 %v1384_v35  ;;  %1223 = vmatpush3.bf16.msra.mxu0 %v1409_v52 }
  0x8b   : > { %1224 = vmatprep.subr.bf16.mxu0 %v1410_v53 }
  0x8d   : > { %750 = vmatpush2.bf16.msra.mxu1 %v1386_v36  ;;  %v566_v36 = vrot.slane %v561_v34, %v368_v56 }
  0x8e   : > { %751 = vmatprep.subr.bf16.mxu1 %v1387_v37  ;;  %1225 = vmatpush3.bf16.msra.mxu0 %v1411_v21 }
  0x8f   : > { %1226 = vmatprep.subr.bf16.mxu0 %v1412_v22 }
  0x90   : > { %511 = vmatmul.mubr.bf16.gmra.mxu0 %v1359_v33  ;;  %v1423_v33 = vld [vmem:[#allocation8] sm:$0xff]  }
  0x91   : > { %752 = vmatpush2.bf16.msra.mxu1 %v1389_v38  ;;  %v570_v38 = vrot.slane %v561_v34, %v372_v58 }
  0x92   : > { %753 = vmatprep.subr.bf16.mxu1 %v1390_v39  ;;  %1227 = vmatpush3.bf16.msra.mxu0 %v1413_v23 }
  0x93   : > { %1228 = vmatprep.subr.bf16.mxu0 %v1414_v24 }
  0x95   : > { %754 = vmatpush2.bf16.msra.mxu1 %v1392_v40 }
  0x96   : > { %755 = vmatprep.subr.bf16.mxu1 %v1393_v41  ;;  %1229 = vmatpush3.bf16.msra.mxu0 %v1415_v25 }
  0x97   : > { %1230 = vmatprep.subr.bf16.mxu0 %v1416_v26 }
  0x99   : > { %756 = vmatpush2.bf16.msra.mxu1 %v1395_v42 }
  0x9a   : > { %757 = vmatprep.subr.bf16.mxu1 %v1396_v43  ;;  %1231 = vmatpush3.bf16.msra.mxu0 %v1417_v27 }
  0x9b   : > { %1232 = vmatprep.subr.bf16.mxu0 %v1418_v28 }
  0x9d   : > { %758 = vmatpush2.bf16.msra.mxu1 %v1398_v44 }
  0x9e   : > { %759 = vmatprep.subr.bf16.mxu1 %v1399_v45  ;;  %1233 = vmatpush3.bf16.msra.mxu0 %v1419_v29 }
  0x9f   : > { %1234 = vmatprep.subr.bf16.mxu0 %v1420_v30 }
  0xa1   : > { %760 = vmatpush2.bf16.msra.mxu1 %v1401_v46 }
  0xa2   : > { %761 = vmatprep.subr.bf16.mxu1 %v1402_v47  ;;  %1235 = vmatpush3.bf16.msra.mxu0 %v1421_v31 }
  0xa3   : > { %1236 = vmatprep.subr.bf16.mxu0 %v1422_v32 }
  0xa5   : > { %762 = vmatpush2.bf16.msra.mxu1 %v1404_v48 }
  0xa6   : > { %763 = vmatprep.subr.bf16.mxu1 %v1405_v49  ;;  %1237 = vmatpush3.bf16.msra.mxu0 %v1423_v33 }
  0xa9   : > { %764 = vmatpush2.bf16.msra.mxu1 %v1407_v50 }
 0x148   : > { %v502_v59 = vpop.f32.mrf.mxu0 }
 0x149   : > { %v503_v1 = vadd.f32 %v502_v59, %v369_v60 }
 0x14a   : > { %v504_v61 = vpop.f32.mrf.mxu0 }
 0x14b   : > { %v505_v3 = vadd.f32 %v504_v61, %v373_v62 }
 0x14c   : > { %v506_v63 = vpop.f32.mrf.mxu0 }
 0x14d   : > { %v507_v0 = vadd.f32 %v506_v63, %v369_v60 }
 0x14e   : > { %v508_v2 = vpop.f32.mrf.mxu0 }
 0x14f   : > { %v509_v4 = vadd.f32 %v508_v2, %v373_v62  ;;  %v521_v5 = vpack.c.bf16 %v507_v0, %v503_v1  ;;  %v1179_v1 = vld [vmem:[%s1913_s6] ss:$0 sm:$0xff] }
 0x150   : > { %v512_v6 = vpop.f32.mrf.mxu0 }
 0x151   : > { %v522_v7 = vpack.c.bf16 %v509_v4, %v505_v3  ;;  %v513_v11 = vadd.f32 %v512_v6, %v369_v60 }
 0x152   : > { %v514_v8 = vpop.f32.mrf.mxu0 }
 0x153   : > { %1424 = vtanh.bf16 %v522_v7  ;;  %v515_v13 = vadd.f32 %v514_v8, %v373_v62 }
 0x154   : > { %1426 = vtanh.bf16 %v521_v5  ;;  %v516_v9 = vpop.f32.mrf.mxu0 }
 0x155   : > { %v517_v10 = vadd.f32 %v516_v9, %v369_v60 }
 0x156   : > { %v518_v12 = vpop.f32.mrf.mxu0 }
 0x157   : > { %v519_v14 = vadd.f32 %v518_v12, %v373_v62  ;;  %v523_v15 = vpack.c.bf16 %v517_v10, %v513_v11 }
 0x159   : > { %v524_v16 = vpack.c.bf16 %v519_v14, %v515_v13 }
 0x15b   : > { %1428 = vtanh.bf16 %v524_v16 }
 0x15c   : > { %1430 = vtanh.bf16 %v523_v15 }
 0x161   : > { %v1425_v17 = vpop.eup %1424 }
 0x162   : > { %v1427_v18 = vpop.eup %1426  ;;  %765 = vmatprep.mubr.bf16.mxu1 %v1425_v17 }
 0x163   : > { %766 = vmatmul.mubr.bf16.vlgmr.msra.gmra.mxu1 %v1427_v18 }
 0x169   : > { %v1429_v19 = vpop.eup %1428 }
 0x16a   : > { %v1431_v20 = vpop.eup %1430  ;;  %775 = vmatprep.mubr.bf16.mxu1 %v1429_v19 }
 0x16b   : > { %776 = vmatmul.mubr.bf16.gmra.mxu1 %v1431_v20 }
 0x223   : > { %v767_v35 = vpop.f32.mrf.mxu1 }
 0x224   : > { %v768_v41 = vadd.f32 %v767_v35, %v566_v36 }
 0x225   : > { %v769_v37 = vpop.f32.mrf.mxu1 }
 0x226   : > { %v770_v43 = vadd.f32 %v769_v37, %v570_v38 }
 0x227   : > { %v771_v39 = vpop.f32.mrf.mxu1 }
 0x228   : > { %v772_v40 = vadd.f32 %v771_v39, %v566_v36 }
 0x229   : > { %v773_v42 = vpop.f32.mrf.mxu1 }
 0x22a   : > { %v774_v44 = vadd.f32 %v773_v42, %v570_v38  ;;  %v786_v45 = vpack.c.bf16 %v772_v40, %v768_v41 }
 0x22b   : > { %v777_v46 = vpop.f32.mrf.mxu1 }
 0x22c   : > { %v787_v47 = vpack.c.bf16 %v774_v44, %v770_v43  ;;  %v778_v51 = vadd.f32 %v777_v46, %v566_v36 }
 0x22d   : > { %v779_v48 = vpop.f32.mrf.mxu1 }
 0x22e   : > { %1432 = vtanh.bf16 %v787_v47  ;;  %v780_v53 = vadd.f32 %v779_v48, %v570_v38 }
 0x22f   : > { %1434 = vtanh.bf16 %v786_v45  ;;  %v781_v49 = vpop.f32.mrf.mxu1 }
 0x230   : > { %v782_v50 = vadd.f32 %v781_v49, %v566_v36 }
 0x231   : > { %v783_v52 = vpop.f32.mrf.mxu1 }
 0x232   : > { %v784_v54 = vadd.f32 %v783_v52, %v570_v38  ;;  %v788_v55 = vpack.c.bf16 %v782_v50, %v778_v51 }
 0x234   : > { %v789_v56 = vpack.c.bf16 %v784_v54, %v780_v53 }
 0x236   : > { %1436 = vtanh.bf16 %v789_v56 }
 0x237   : > { %1438 = vtanh.bf16 %v788_v55 }
 0x23c   : > { %v1433_v57 = vpop.eup %1432 }
 0x23d   : > { %v1435_v58 = vpop.eup %1434  ;;  %961 = vmatprep.mubr.bf16.mxu0 %v1433_v57 }
 0x23e   : > { %962 = vmatmul.mubr.bf16.vlgmr.msra.gmra.mxu0 %v1435_v58 }
 0x244   : > { %v1437_v59 = vpop.eup %1436 }
 0x245   : > { %v1439_v60 = vpop.eup %1438  ;;  %969 = vmatprep.mubr.bf16.mxu0 %v1437_v59 }
 0x246   : > { %970 = vmatmul.mubr.bf16.gmra.mxu0 %v1439_v60 }
 0x2fe   : > { %v1238_v61 = vpop.f32.mrf.mxu0 }
 0x300   : > { %v1239_v62 = vpop.f32.mrf.mxu0 }
 0x301   : > { %v1240_v0 = vadd.f32 %v1239_v62, %v1238_v61 }
 0x302   : > { %v1241_v63 = vpop.f32.mrf.mxu0 }
 0x303   : > { %v964_v5 = vadd.f32 %v1240_v0, %v1179_v1 }
 0x304   : > { %v1242_v2 = vpop.f32.mrf.mxu0 }
 0x305   : > { %v1243_v3 = vadd.f32 %v1242_v2, %v1241_v63 }
 0x306   : > { %v1244_v4 = vpop.f32.mrf.mxu0 }
 0x307   : > { %v967_v6 = vadd.f32 %v1243_v3, %v1179_v1 }
 0x308   : > { %v1245_v7 = vpop.f32.mrf.mxu0 }
 0x309   : > { %v1214_v8 = vpack.c.bf16 %v967_v6, %v964_v5  ;;  %v1246_v10 = vadd.f32 %v1245_v7, %v1244_v4 }
 0x30a   : > { %v1247_v9 = vpop.f32.mrf.mxu0 }
 0x30b   : > { %1215 = vst [vmem:[%s340_s14] sm:$0xff] %v1214_v8   ;;  %v972_v13 = vadd.f32 %v1246_v10, %v1179_v1 }
 0x30c   : > { %v1248_v11 = vpop.f32.mrf.mxu0 }
 0x30d   : > { %v1249_v12 = vadd.f32 %v1248_v11, %v1247_v9 }
 0x30f   : > { %v975_v14 = vadd.f32 %v1249_v12, %v1179_v1 }
 0x311   : > { %v1219_v15 = vpack.c.bf16 %v975_v14, %v972_v13 }
 0x313   : > { %1221 = vst [vmem:[%s340_s14 + $0x8] sm:$0xff] %v1219_v15  }
 0x314   : > { %1559 = shalt.err (!%p1556_p9)
}
 0x315   : > { %s1560_s10 = scalar_lea.hbm %s1864_s16, 256  ;;  %s1564_s29 = scalar_lea.hbm %s1914_s7, 512 }
 0x316   : > { %p1561_p1 = scmp.ne.s32.totalorder %s1864_s16, %s1560_s10  ;;  %p1565_p11 = scmp.lt.s32.totalorder %s1864_s16, %s1914_s7 }
 0x317   : > { %p1566_p13 = scmp.lt.s32.totalorder %s1564_s29, %s1560_s10 }
 0x318   : > { %p1562_p8 = pnand %p1561_p1, %p1938_p6 }
 0x319   : > { %p1567_p2 = por %p1566_p13, %p1565_p11 }
 0x31a   : > { %p1563_p10 = pneg %p1562_p8 }
 0x31c   : > { %p1568_p4 = pnand %p1567_p2, %p1563_p10 }
 0x31e   : > { %1571 = shalt.err (!%p1568_p4)
}
 0x31f   : > { %s1630_s11 = smov 64   ;;  %s1631_s23 = smov 4  }
 0x320   : > { %1264 = dma.vmem_to_hbm [thread:$0]  (%p1938_p6), %s1859_s21, 256, %s1864_s16, %s999_s1, %s1630_s11, %s1630_s11, %s1631_s23  }
 0x321 PF: > { %s1027_s18 = sand.u32 1, %s1606_s24   ;;  %p1939_p12 = scmp.ne.s32.totalorder %s1923_s8, 0 }
 0x322   : > { %p1940_p0 = scmp.ge.s32.totalorder %s1618_s27, 2  ;;  %s1028_s28 = scalar_lea.sflag [#allocation4], %s1027_s18 }
 0x324   : > { %p1281_p5 = pnand %p1940_p0, %p1939_p12 }
 0x326   : > { %p1282_p3 = pneg %p1281_p5 }
 0x328   : > { %1601 = dma.done.wait (%p1282_p3), %s1028_s28, 256  }
 0x329   : > { %1603 = vsyncadd (%p1282_p3), %s1028_s28, 4294967040  ;;  %p22_p7 = scmp.ge.s32.totalorder %s1755_s17, 4   ;;  %s1941_s24 = smov %s1610_s25 }
 0x32a   : > { %s1942_s25 = smov %s1614_s26  ;;  %s1943_s26 = smov %s1765_s20 }
 0x32b   : > { %s1944_s27 = smov %s1755_s17  ;;  %24 = sbr.rel (!%p22_p7) target bundleno = 9 (0x9), region = 105 }
 0x330   :  { %1033 = vsyncpa [#allocation3], 1 }
 0x331   :  { %1035 = vsyncpa [#allocation3 + $0x1], 1 }
 0x332   :  { %1036 = vsyncpa [#allocation6], 1 }
 0x333   :  { %1037 = vsyncpa [#allocation9], 1 }
 0x334   :  { %1038 = vsyncpa [#allocation4], 1 }
 0x335   :  { %1040 = vsyncpa [#allocation4 + $0x1], 1 }

</bundles_post_ra>
